<compile_context>
chip_gen: v5e
topology: v5e:2x2
jax: 0.10.0
libtpu: 0.0.40
codegen_flags: <defaults>
</compile_context>

<pallas_src>
import functools

import jax
import jax.numpy as jnp
import numpy as np
from jax import lax
from jax.experimental import pallas as pl
from jax.experimental.pallas import tpu as pltpu

BN_EPS = 1e-5
LANE = 128
SUBLANE = 8


def _round_up(n, m):
    return ((n + m - 1) // m) * m


# --------------------------------- kernel ----------------------------------
def residual_block_kernel(k1, k2, pool, downsample, n_valid, cout_pad,
                          x_ref, w1_ref, w2_ref, g_ref, b_ref, msk_ref, o_ref):
    ncols = x_ref.shape[1]                     # lane-padded N*L
    x = x_ref[...]
    gamma = g_ref[...]                         # (Cout_pad, 1)
    beta = b_ref[...]                          # (Cout_pad, 1)
    inv_n = 1.0 / n_valid                      # stats over the valid N*L only

    def bn(y):
        # Training-mode BatchNorm1d folded to per-channel scale/shift.
        # Lane-padding columns of y are exactly zero (masked slab + zero-padded
        # weights), so full-width sums equal sums over the valid columns.
        mean = jnp.sum(y, axis=1, keepdims=True) * inv_n
        ex2 = jnp.sum(y * y, axis=1, keepdims=True) * inv_n
        var = jnp.maximum(ex2 - mean * mean, 0.0)   # clamp f32 cancellation
        scale = gamma * lax.rsqrt(var + BN_EPS)
        shift = beta - mean * scale
        return y * scale + shift

    def make_slab(src, k, mask_row0):
        # im2col as values: per tap t an XLU lane-roll of `src` (out[:, j] =
        # src[:, j + t - pad_l]) times a precomputed 0/1 sample-boundary mask,
        # concatenated along sublanes (every block is 8-row aligned).
        pad_l = (k - 1) // 2
        blocks = []
        for t in range(k):
            shift = (pad_l - t) % ncols
            rolled = src if shift == 0 else pltpu.roll(src, shift=shift, axis=1)
            mask = msk_ref[mask_row0 + t:mask_row0 + t + 1, :]   # (1, ncols)
            blocks.append(rolled * mask)
        return jnp.concatenate(blocks, axis=0)

    # ---- conv1 ('same') + fused 1x1 downsample conv: ONE MXU matmul ---------
    slab1 = make_slab(x, k1, 0)
    y = jnp.dot(w1_ref[...], slab1, preferred_element_type=jnp.float32)
    if downsample:
        y1 = y[:cout_pad, :]
        identity = bn(y[cout_pad:, :])         # bn2(conv_downsample(x))
    else:
        y1 = y
        identity = x                           # Cin == Cout (asserted in wrapper)
    out1 = jnp.clip(bn(y1), 0.0, 6.0)          # relu6(bn2(conv1(x)))

    # ---- conv2 (kernel k2, 'same' => (k2-1)//2 left pad) + bn2 --------------
    slab2 = make_slab(out1, k2, k1)
    y2 = jnp.dot(w2_ref[...], slab2, preferred_element_type=jnp.float32)
    out2 = bn(y2)

    act = jnp.clip(out2 + identity, 0.0, 6.0)

    # ---- MaxPool1d(pool): rolling max over `pool` consecutive positions -----
    # Every pooled window lies inside one sample, so lane rolls that wrap
    # across samples / padding only feed positions the wrapper discards.
    m = act
    for p in range(1, pool):
        m = jnp.maximum(m, pltpu.roll(act, shift=(-p) % ncols, axis=1))
    o_ref[...] = m                             # single dense lane-aligned store


# -------------------------------- wrapper -----------------------------------
def residual_block(x, params, kernel_size, pool=3):
    """Forward pass of Residual_block with BatchNorm1d in TRAINING mode."""
    N, Cin, L = x.shape
    Cout, _, K1 = params["w1"].shape
    K2 = params["w2"].shape[2]
    assert K1 == kernel_size
    downsample = Cin != Cout
    if not downsample:
        assert Cin == Cout, "identity path requires matching channel counts"
    L_out = L // pool
    NL = N * L
    NLpad = _round_up(max(NL, LANE), LANE)       # lane-dense internal width
    Cin_pad = _round_up(Cin, SUBLANE)
    Cout_pad = _round_up(Cout, SUBLANE)
    f32 = jnp.float32

    # NCL -> (Cin_pad, NLpad): channels on sublanes, batch*length on lanes.
    x2d = jnp.transpose(x.astype(f32), (1, 0, 2)).reshape(Cin, NL)
    x2d = jnp.pad(x2d, ((0, Cin_pad - Cin), (0, NLpad - NL)))

    def pack(w, cout_p, cin_p):
        # (Cout, Cin, K) -> (cout_p, K*cin_p); row block t holds tap t, with
        # Cin zero-padded so every tap block starts on a sublane-tile boundary.
        co, ci, k = w.shape
        wt = jnp.transpose(w.astype(f32), (0, 2, 1))             # (co, k, ci)
        wt = jnp.pad(wt, ((0, cout_p - co), (0, 0), (0, cin_p - ci)))
        return wt.reshape(cout_p, k * cin_p)

    w1p = pack(params["w1"], Cout_pad, Cin_pad)
    if downsample:
        # Fuse the 1x1 downsample conv as extra output rows of the conv1
        # matmul: its RHS is exactly the unshifted center-tap slab block.
        pad_l1 = (K1 - 1) // 2
        wd = params["wd"].astype(f32)[:, :, 0]                   # (Cout, Cin)
        wde = jnp.zeros((Cout_pad, K1, Cin_pad), f32)
        wde = wde.at[:Cout, pad_l1, :Cin].set(wd)
        w1e = jnp.concatenate([w1p, wde.reshape(Cout_pad, K1 * Cin_pad)], 0)
    else:
        w1e = w1p                              # no dead (Cout,Cin) zero DMA
    w2p = pack(params["w2"], Cout_pad, Cout_pad)
    gamma = jnp.pad(params["gamma"].astype(f32), (0, Cout_pad - Cout)).reshape(Cout_pad, 1)
    beta = jnp.pad(params["beta"].astype(f32), (0, Cout_pad - Cout)).reshape(Cout_pad, 1)

    # Per-tap 0/1 sample-boundary masks: rows [0,K1) conv1, rows [K1,K1+K2) conv2.
    def tap_masks(k):
        pad_l = (k - 1) // 2
        l_idx = np.arange(NL) % L
        m = np.zeros((k, NLpad), np.float32)
        for t in range(k):
            d = t - pad_l
            m[t, :NL] = ((l_idx + d >= 0) & (l_idx + d < L)).astype(np.float32)
        return m
    masks = jnp.asarray(np.concatenate([tap_masks(K1), tap_masks(K2)], axis=0))

    vmem = pl.BlockSpec(memory_space=pltpu.MemorySpace.VMEM)
    kern = functools.partial(residual_block_kernel, K1, K2, pool, downsample,
                             NL, Cout_pad)
    m_out = pl.pallas_call(
        kern,
        out_shape=jax.ShapeDtypeStruct((Cout_pad, NLpad), f32),
        in_specs=[vmem] * 6,
        out_specs=vmem,
        # Working set ~= (K1*Cin_pad + K2*Cout_pad + ~6*Cout_pad)*NLpad*4B,
        # far under budget at these shapes; set the scoped limit explicitly so
        # it is also valid under v7x's 64 MiB physical VMEM.
        compiler_params=pltpu.CompilerParams(vmem_limit_bytes=32 * 1024 * 1024),
    )(x2d, w1e, w2p, gamma, beta, masks)

    # Stride-`pool` decimation of the in-kernel rolling max, drop the channel /
    # lane padding, and return (N, Cout, L_out).
    m_valid = m_out[:Cout, :NL].reshape(Cout, N, L)
    pooled = m_valid[:, :, 0:L_out * pool:pool]
    return jnp.transpose(pooled, (1, 0, 2))


# ----------------------- pure-JAX reference (checking) ----------------------
def ref_forward(x, params, kernel_size, pool=3):
    Cin, Cout = x.shape[1], params["w1"].shape[0]
    downsample = Cin != Cout

    def conv(y, w, b, k):
        p = (k - 1) // 2
        out = lax.conv_general_dilated(y, w, window_strides=(1,),
                                       padding=[(p, (k - 1) - p)],
                                       dimension_numbers=("NCH", "OIH", "NCH"))
        return out + b.reshape(1, -1, 1)

    def bn(y):
        mean = jnp.mean(y, axis=(0, 2), keepdims=True)
        var = jnp.mean((y - mean) ** 2, axis=(0, 2), keepdims=True)
        return (params["gamma"].reshape(1, -1, 1) * (y - mean)
                / jnp.sqrt(var + BN_EPS) + params["beta"].reshape(1, -1, 1))

    relu6 = lambda y: jnp.clip(y, 0.0, 6.0)

    out1 = relu6(bn(conv(x, params["w1"], params["b1"], kernel_size)))
    out2 = bn(conv(out1, params["w2"], params["b2"], 10))
    identity = bn(conv(x, params["wd"], params["bd"], 1)) if downsample else x
    out = relu6(out2 + identity)
    return lax.reduce_window(out, -jnp.inf, lax.max,
                             (1, 1, pool), (1, 1, pool), "VALID")


# ---------------------------------- main ------------------------------------
if __name__ == "__main__":
    key = jax.random.PRNGKey(0)
    N, Cin, Cout, L = 2, 4, 8, 30      # num_filts = [4, 8] -> downsample path taken
    K1 = 3                             # kernel_size of conv1

    ks = jax.random.split(key, 9)
    params = dict(
        w1=0.2 * jax.random.normal(ks[0], (Cout, Cin, K1), jnp.float32),
        b1=0.1 * jax.random.normal(ks[1], (Cout,), jnp.float32),
        w2=0.2 * jax.random.normal(ks[2], (Cout, Cout, 10), jnp.float32),
        b2=0.1 * jax.random.normal(ks[3], (Cout,), jnp.float32),
        wd=0.2 * jax.random.normal(ks[4], (Cout, Cin, 1), jnp.float32),
        bd=0.1 * jax.random.normal(ks[5], (Cout,), jnp.float32),
        gamma=1.0 + 0.1 * jax.random.normal(ks[6], (Cout,), jnp.float32),
        beta=0.1 * jax.random.normal(ks[7], (Cout,), jnp.float32),
    )
    x = jax.random.normal(ks[8], (N, Cin, L), jnp.float32)

    out = jax.block_until_ready(residual_block(x, params, K1))

    ref = ref_forward(x, params, K1)
    assert out.shape == (N, Cout, L // 3), out.shape
    np.testing.assert_allclose(np.asarray(out), np.asarray(ref),
                               rtol=2e-4, atol=2e-4)
    print("KERNEL_OK")
</pallas_src>

<mosaic_0001>
module attributes {stable_mosaic.version = 11 : i64} {
  func.func @residual_block_kernel(%arg0: memref<8x128xf32, #tpu.memory_space<vmem>>, %arg1: memref<16x24xf32, #tpu.memory_space<vmem>>, %arg2: memref<8x80xf32, #tpu.memory_space<vmem>>, %arg3: memref<8x1xf32, #tpu.memory_space<vmem>>, %arg4: memref<8x1xf32, #tpu.memory_space<vmem>>, %arg5: memref<13x128xf32, #tpu.memory_space<vmem>>, %arg6: memref<8x128xf32, #tpu.memory_space<vmem>>) attributes {dimension_semantics = [], scalar_prefetch = 0 : i64, scratch_operands = 0 : i64, tpu.core_type = #tpu.core_type<tc>} {
    %c0 = arith.constant 0 : index
    %c0_0 = arith.constant 0 : index
    %0 = vector.load %arg0[%c0, %c0_0] : memref<8x128xf32, #tpu.memory_space<vmem>>, vector<8x128xf32>
    %c0_1 = arith.constant 0 : index
    %c0_2 = arith.constant 0 : index
    %1 = vector.load %arg3[%c0_1, %c0_2] : memref<8x1xf32, #tpu.memory_space<vmem>>, vector<8x1xf32>
    %c0_3 = arith.constant 0 : index
    %c0_4 = arith.constant 0 : index
    %2 = vector.load %arg4[%c0_3, %c0_4] : memref<8x1xf32, #tpu.memory_space<vmem>>, vector<8x1xf32>
    %c1_i32 = arith.constant 1 : i32
    %3 = tpu.dynamic_rotate %0 by %c1_i32 dim 1 : vector<8x128xf32>, i32 -> vector<8x128xf32>
    %c0_5 = arith.constant 0 : index
    %c0_6 = arith.constant 0 : index
    %4 = vector.load %arg5[%c0_5, %c0_6] : memref<13x128xf32, #tpu.memory_space<vmem>>, vector<1x128xf32>
    %5 = vector.broadcast %4 : vector<1x128xf32> to vector<8x128xf32>
    %6 = arith.mulf %3, %5 : vector<8x128xf32>
    %c1 = arith.constant 1 : index
    %c0_7 = arith.constant 0 : index
    %7 = vector.load %arg5[%c1, %c0_7] : memref<13x128xf32, #tpu.memory_space<vmem>>, vector<1x128xf32>
    %8 = vector.broadcast %7 : vector<1x128xf32> to vector<8x128xf32>
    %9 = arith.mulf %0, %8 : vector<8x128xf32>
    %c127_i32 = arith.constant 127 : i32
    %10 = tpu.dynamic_rotate %0 by %c127_i32 dim 1 : vector<8x128xf32>, i32 -> vector<8x128xf32>
    %c2 = arith.constant 2 : index
    %c0_8 = arith.constant 0 : index
    %11 = vector.load %arg5[%c2, %c0_8] : memref<13x128xf32, #tpu.memory_space<vmem>>, vector<1x128xf32>
    %12 = vector.broadcast %11 : vector<1x128xf32> to vector<8x128xf32>
    %13 = arith.mulf %10, %12 : vector<8x128xf32>
    %14 = tpu.concatenate %6, %9, %13 in 0 : vector<8x128xf32>, vector<8x128xf32>, vector<8x128xf32> -> vector<24x128xf32>
    %c0_9 = arith.constant 0 : index
    %c0_10 = arith.constant 0 : index
    %15 = vector.load %arg1[%c0_9, %c0_10] : memref<16x24xf32, #tpu.memory_space<vmem>>, vector<16x24xf32>
    %cst = arith.constant dense<0.000000e+00> : vector<16x128xf32>
    %16 = tpu.matmul %15, %14, %cst {dimension_numbers = #tpu.dot_dimension_numbers<[1], [0], [0], [1], [0, 0, 1, 1], [], []>} : vector<16x24xf32>, vector<24x128xf32>, vector<16x128xf32> -> vector<16x128xf32>
    %17 = vector.extract_strided_slice %16 {offsets = [0, 0], sizes = [8, 128], strides = [1, 1]} : vector<16x128xf32> to vector<8x128xf32>
    %18 = vector.extract_strided_slice %16 {offsets = [8, 0], sizes = [8, 128], strides = [1, 1]} : vector<16x128xf32> to vector<8x128xf32>
    %cst_11 = arith.constant dense<0.000000e+00> : vector<8xf32>
    %19 = vector.multi_reduction <add>, %18, %cst_11 [1] : vector<8x128xf32> to vector<8xf32>
    %20 = vector.shape_cast %19 : vector<8xf32> to vector<8x1xf32>
    %cst_12 = arith.constant 0.0166666675 : f32
    %21 = vector.broadcast %cst_12 : f32 to vector<8x1xf32>
    %22 = arith.mulf %20, %21 : vector<8x1xf32>
    %23 = arith.mulf %18, %18 : vector<8x128xf32>
    %cst_13 = arith.constant dense<0.000000e+00> : vector<8xf32>
    %24 = vector.multi_reduction <add>, %23, %cst_13 [1] : vector<8x128xf32> to vector<8xf32>
    %25 = vector.shape_cast %24 : vector<8xf32> to vector<8x1xf32>
    %cst_14 = arith.constant 0.0166666675 : f32
    %26 = vector.broadcast %cst_14 : f32 to vector<8x1xf32>
    %27 = arith.mulf %25, %26 : vector<8x1xf32>
    %28 = arith.mulf %22, %22 : vector<8x1xf32>
    %29 = arith.subf %27, %28 : vector<8x1xf32>
    %cst_15 = arith.constant 0.000000e+00 : f32
    %30 = vector.broadcast %cst_15 : f32 to vector<8x1xf32>
    %31 = arith.maximumf %29, %30 : vector<8x1xf32>
    %cst_16 = arith.constant 9.99999974E-6 : f32
    %32 = vector.broadcast %cst_16 : f32 to vector<8x1xf32>
    %33 = arith.addf %31, %32 : vector<8x1xf32>
    %34 = math.rsqrt %33 : vector<8x1xf32>
    %35 = arith.mulf %1, %34 : vector<8x1xf32>
    %36 = arith.mulf %22, %35 : vector<8x1xf32>
    %37 = arith.subf %2, %36 : vector<8x1xf32>
    %38 = vector.broadcast %35 : vector<8x1xf32> to vector<8x128xf32>
    %39 = arith.mulf %18, %38 : vector<8x128xf32>
    %40 = vector.broadcast %37 : vector<8x1xf32> to vector<8x128xf32>
    %41 = arith.addf %39, %40 : vector<8x128xf32>
    %cst_17 = arith.constant dense<0.000000e+00> : vector<8xf32>
    %42 = vector.multi_reduction <add>, %17, %cst_17 [1] : vector<8x128xf32> to vector<8xf32>
    %43 = vector.shape_cast %42 : vector<8xf32> to vector<8x1xf32>
    %cst_18 = arith.constant 0.0166666675 : f32
    %44 = vector.broadcast %cst_18 : f32 to vector<8x1xf32>
    %45 = arith.mulf %43, %44 : vector<8x1xf32>
    %46 = arith.mulf %17, %17 : vector<8x128xf32>
    %cst_19 = arith.constant dense<0.000000e+00> : vector<8xf32>
    %47 = vector.multi_reduction <add>, %46, %cst_19 [1] : vector<8x128xf32> to vector<8xf32>
    %48 = vector.shape_cast %47 : vector<8xf32> to vector<8x1xf32>
    %cst_20 = arith.constant 0.0166666675 : f32
    %49 = vector.broadcast %cst_20 : f32 to vector<8x1xf32>
    %50 = arith.mulf %48, %49 : vector<8x1xf32>
    %51 = arith.mulf %45, %45 : vector<8x1xf32>
    %52 = arith.subf %50, %51 : vector<8x1xf32>
    %cst_21 = arith.constant 0.000000e+00 : f32
    %53 = vector.broadcast %cst_21 : f32 to vector<8x1xf32>
    %54 = arith.maximumf %52, %53 : vector<8x1xf32>
    %cst_22 = arith.constant 9.99999974E-6 : f32
    %55 = vector.broadcast %cst_22 : f32 to vector<8x1xf32>
    %56 = arith.addf %54, %55 : vector<8x1xf32>
    %57 = math.rsqrt %56 : vector<8x1xf32>
    %58 = arith.mulf %1, %57 : vector<8x1xf32>
    %59 = arith.mulf %45, %58 : vector<8x1xf32>
    %60 = arith.subf %2, %59 : vector<8x1xf32>
    %61 = vector.broadcast %58 : vector<8x1xf32> to vector<8x128xf32>
    %62 = arith.mulf %17, %61 : vector<8x128xf32>
    %63 = vector.broadcast %60 : vector<8x1xf32> to vector<8x128xf32>
    %64 = arith.addf %62, %63 : vector<8x128xf32>
    %cst_23 = arith.constant 0.000000e+00 : f32
    %cst_24 = arith.constant 6.000000e+00 : f32
    %65 = vector.broadcast %cst_23 : f32 to vector<8x128xf32>
    %66 = arith.maximumf %65, %64 : vector<8x128xf32>
    %67 = vector.broadcast %cst_24 : f32 to vector<8x128xf32>
    %68 = arith.minimumf %67, %66 : vector<8x128xf32>
    %c4_i32 = arith.constant 4 : i32
    %69 = tpu.dynamic_rotate %68 by %c4_i32 dim 1 : vector<8x128xf32>, i32 -> vector<8x128xf32>
    %c3 = arith.constant 3 : index
    %c0_25 = arith.constant 0 : index
    %70 = vector.load %arg5[%c3, %c0_25] : memref<13x128xf32, #tpu.memory_space<vmem>>, vector<1x128xf32>
    %71 = vector.broadcast %70 : vector<1x128xf32> to vector<8x128xf32>
    %72 = arith.mulf %69, %71 : vector<8x128xf32>
    %c3_i32 = arith.constant 3 : i32
    %73 = tpu.dynamic_rotate %68 by %c3_i32 dim 1 : vector<8x128xf32>, i32 -> vector<8x128xf32>
    %c4 = arith.constant 4 : index
    %c0_26 = arith.constant 0 : index
    %74 = vector.load %arg5[%c4, %c0_26] : memref<13x128xf32, #tpu.memory_space<vmem>>, vector<1x128xf32>
    %75 = vector.broadcast %74 : vector<1x128xf32> to vector<8x128xf32>
    %76 = arith.mulf %73, %75 : vector<8x128xf32>
    %c2_i32 = arith.constant 2 : i32
    %77 = tpu.dynamic_rotate %68 by %c2_i32 dim 1 : vector<8x128xf32>, i32 -> vector<8x128xf32>
    %c5 = arith.constant 5 : index
    %c0_27 = arith.constant 0 : index
    %78 = vector.load %arg5[%c5, %c0_27] : memref<13x128xf32, #tpu.memory_space<vmem>>, vector<1x128xf32>
    %79 = vector.broadcast %78 : vector<1x128xf32> to vector<8x128xf32>
    %80 = arith.mulf %77, %79 : vector<8x128xf32>
    %c1_i32_28 = arith.constant 1 : i32
    %81 = tpu.dynamic_rotate %68 by %c1_i32_28 dim 1 : vector<8x128xf32>, i32 -> vector<8x128xf32>
    %c6 = arith.constant 6 : index
    %c0_29 = arith.constant 0 : index
    %82 = vector.load %arg5[%c6, %c0_29] : memref<13x128xf32, #tpu.memory_space<vmem>>, vector<1x128xf32>
    %83 = vector.broadcast %82 : vector<1x128xf32> to vector<8x128xf32>
    %84 = arith.mulf %81, %83 : vector<8x128xf32>
    %c7 = arith.constant 7 : index
    %c0_30 = arith.constant 0 : index
    %85 = vector.load %arg5[%c7, %c0_30] : memref<13x128xf32, #tpu.memory_space<vmem>>, vector<1x128xf32>
    %86 = vector.broadcast %85 : vector<1x128xf32> to vector<8x128xf32>
    %87 = arith.mulf %68, %86 : vector<8x128xf32>
    %c127_i32_31 = arith.constant 127 : i32
    %88 = tpu.dynamic_rotate %68 by %c127_i32_31 dim 1 : vector<8x128xf32>, i32 -> vector<8x128xf32>
    %c8 = arith.constant 8 : index
    %c0_32 = arith.constant 0 : index
    %89 = vector.load %arg5[%c8, %c0_32] : memref<13x128xf32, #tpu.memory_space<vmem>>, vector<1x128xf32>
    %90 = vector.broadcast %89 : vector<1x128xf32> to vector<8x128xf32>
    %91 = arith.mulf %88, %90 : vector<8x128xf32>
    %c126_i32 = arith.constant 126 : i32
    %92 = tpu.dynamic_rotate %68 by %c126_i32 dim 1 : vector<8x128xf32>, i32 -> vector<8x128xf32>
    %c9 = arith.constant 9 : index
    %c0_33 = arith.constant 0 : index
    %93 = vector.load %arg5[%c9, %c0_33] : memref<13x128xf32, #tpu.memory_space<vmem>>, vector<1x128xf32>
    %94 = vector.broadcast %93 : vector<1x128xf32> to vector<8x128xf32>
    %95 = arith.mulf %92, %94 : vector<8x128xf32>
    %c125_i32 = arith.constant 125 : i32
    %96 = tpu.dynamic_rotate %68 by %c125_i32 dim 1 : vector<8x128xf32>, i32 -> vector<8x128xf32>
    %c10 = arith.constant 10 : index
    %c0_34 = arith.constant 0 : index
    %97 = vector.load %arg5[%c10, %c0_34] : memref<13x128xf32, #tpu.memory_space<vmem>>, vector<1x128xf32>
    %98 = vector.broadcast %97 : vector<1x128xf32> to vector<8x128xf32>
    %99 = arith.mulf %96, %98 : vector<8x128xf32>
    %c124_i32 = arith.constant 124 : i32
    %100 = tpu.dynamic_rotate %68 by %c124_i32 dim 1 : vector<8x128xf32>, i32 -> vector<8x128xf32>
    %c11 = arith.constant 11 : index
    %c0_35 = arith.constant 0 : index
    %101 = vector.load %arg5[%c11, %c0_35] : memref<13x128xf32, #tpu.memory_space<vmem>>, vector<1x128xf32>
    %102 = vector.broadcast %101 : vector<1x128xf32> to vector<8x128xf32>
    %103 = arith.mulf %100, %102 : vector<8x128xf32>
    %c123_i32 = arith.constant 123 : i32
    %104 = tpu.dynamic_rotate %68 by %c123_i32 dim 1 : vector<8x128xf32>, i32 -> vector<8x128xf32>
    %c12 = arith.constant 12 : index
    %c0_36 = arith.constant 0 : index
    %105 = vector.load %arg5[%c12, %c0_36] : memref<13x128xf32, #tpu.memory_space<vmem>>, vector<1x128xf32>
    %106 = vector.broadcast %105 : vector<1x128xf32> to vector<8x128xf32>
    %107 = arith.mulf %104, %106 : vector<8x128xf32>
    %108 = tpu.concatenate %72, %76, %80, %84, %87, %91, %95, %99, %103, %107 in 0 : vector<8x128xf32>, vector<8x128xf32>, vector<8x128xf32>, vector<8x128xf32>, vector<8x128xf32>, vector<8x128xf32>, vector<8x128xf32>, vector<8x128xf32>, vector<8x128xf32>, vector<8x128xf32> -> vector<80x128xf32>
    %c0_37 = arith.constant 0 : index
    %c0_38 = arith.constant 0 : index
    %109 = vector.load %arg2[%c0_37, %c0_38] : memref<8x80xf32, #tpu.memory_space<vmem>>, vector<8x80xf32>
    %cst_39 = arith.constant dense<0.000000e+00> : vector<8x128xf32>
    %110 = tpu.matmul %109, %108, %cst_39 {dimension_numbers = #tpu.dot_dimension_numbers<[1], [0], [0], [1], [0, 0, 1, 1], [], []>} : vector<8x80xf32>, vector<80x128xf32>, vector<8x128xf32> -> vector<8x128xf32>
    %cst_40 = arith.constant dense<0.000000e+00> : vector<8xf32>
    %111 = vector.multi_reduction <add>, %110, %cst_40 [1] : vector<8x128xf32> to vector<8xf32>
    %112 = vector.shape_cast %111 : vector<8xf32> to vector<8x1xf32>
    %cst_41 = arith.constant 0.0166666675 : f32
    %113 = vector.broadcast %cst_41 : f32 to vector<8x1xf32>
    %114 = arith.mulf %112, %113 : vector<8x1xf32>
    %115 = arith.mulf %110, %110 : vector<8x128xf32>
    %cst_42 = arith.constant dense<0.000000e+00> : vector<8xf32>
    %116 = vector.multi_reduction <add>, %115, %cst_42 [1] : vector<8x128xf32> to vector<8xf32>
    %117 = vector.shape_cast %116 : vector<8xf32> to vector<8x1xf32>
    %cst_43 = arith.constant 0.0166666675 : f32
    %118 = vector.broadcast %cst_43 : f32 to vector<8x1xf32>
    %119 = arith.mulf %117, %118 : vector<8x1xf32>
    %120 = arith.mulf %114, %114 : vector<8x1xf32>
    %121 = arith.subf %119, %120 : vector<8x1xf32>
    %cst_44 = arith.constant 0.000000e+00 : f32
    %122 = vector.broadcast %cst_44 : f32 to vector<8x1xf32>
    %123 = arith.maximumf %121, %122 : vector<8x1xf32>
    %cst_45 = arith.constant 9.99999974E-6 : f32
    %124 = vector.broadcast %cst_45 : f32 to vector<8x1xf32>
    %125 = arith.addf %123, %124 : vector<8x1xf32>
    %126 = math.rsqrt %125 : vector<8x1xf32>
    %127 = arith.mulf %1, %126 : vector<8x1xf32>
    %128 = arith.mulf %114, %127 : vector<8x1xf32>
    %129 = arith.subf %2, %128 : vector<8x1xf32>
    %130 = vector.broadcast %127 : vector<8x1xf32> to vector<8x128xf32>
    %131 = arith.mulf %110, %130 : vector<8x128xf32>
    %132 = vector.broadcast %129 : vector<8x1xf32> to vector<8x128xf32>
    %133 = arith.addf %131, %132 : vector<8x128xf32>
    %134 = arith.addf %133, %41 : vector<8x128xf32>
    %cst_46 = arith.constant 0.000000e+00 : f32
    %cst_47 = arith.constant 6.000000e+00 : f32
    %135 = vector.broadcast %cst_46 : f32 to vector<8x128xf32>
    %136 = arith.maximumf %135, %134 : vector<8x128xf32>
    %137 = vector.broadcast %cst_47 : f32 to vector<8x128xf32>
    %138 = arith.minimumf %137, %136 : vector<8x128xf32>
    %c127_i32_48 = arith.constant 127 : i32
    %139 = tpu.dynamic_rotate %138 by %c127_i32_48 dim 1 : vector<8x128xf32>, i32 -> vector<8x128xf32>
    %140 = arith.maximumf %138, %139 : vector<8x128xf32>
    %c126_i32_49 = arith.constant 126 : i32
    %141 = tpu.dynamic_rotate %138 by %c126_i32_49 dim 1 : vector<8x128xf32>, i32 -> vector<8x128xf32>
    %142 = arith.maximumf %140, %141 : vector<8x128xf32>
    %c0_50 = arith.constant 0 : index
    %c0_51 = arith.constant 0 : index
    %143 = vector.load %arg6[%c0_50, %c0_51] : memref<8x128xf32, #tpu.memory_space<vmem>>, vector<8x128xf32>
    tpu.vector_store %arg6[%c0_50, %c0_51], %142 {strides = array<i32>} : memref<8x128xf32, #tpu.memory_space<vmem>>, vector<8x128xf32>,
    return
  }
}

</mosaic_0001>

<bundles_post_ra>
// kernel: tpu_custom_call.1
= control target key start
LH: loop header
LB: loop body
LE: loop exit
PB: predicated region body
PF: predicated region fallthrough
CT: control target
= control target key end

     0   :  { %11 = vsyncpa [#allocation3], 0  ;;  %s569_s0 = inlined_call_operand.hbm [shape: f32[8,128], index: 0, kind: input, shape index: {}]   ;;  %s570_s1 = inlined_call_operand.vmem [shape: f32[16,24], index: 1, kind: input, shape index: {}]   ;;  %s571_s2 = inlined_call_operand.hbm [shape: f32[8,80], index: 2, kind: input, shape index: {}]   ;;  %s572_s3 = inlined_call_operand.vmem [shape: f32[8,1], index: 3, kind: input, shape index: {}]   ;;  %s573_s4 = inlined_call_operand.vmem [shape: f32[8,1], index: 4, kind: input, shape index: {}]   ;;  %s574_s5 = inlined_call_operand.hbm [shape: f32[13,128], index: 5, kind: input, shape index: {}]   ;;  %s575_s6 = inlined_call_operand.hbm [shape: f32[8,128], index: 6, kind: output, shape index: {}]  }
   0x1   :  { %12 = vsyncpa [#allocation6], 0  ;;  %s32_s23 = sshll.u32 %s571_s2, 4  ;;  %s33_s23 = int_to_ptr.hbm [resolvable:$true] %s32_s23 }
   0x2   :  { %13 = vsyncpa [#allocation4], 0  ;;  %s469_s24 = smov [#allocation5]   ;;  %s19_s28 = sshll.u32 %s569_s0, 4  ;;  %s20_s28 = int_to_ptr.hbm [resolvable:$true] %s19_s28 }
   0x3   :  { %s34_s25 = sshll.u32 %s469_s24, 4  ;;  %s470_s29 = smov [#allocation2]   ;;  %s35_s25 = int_to_ptr.vmem [resolvable:$true] %s34_s25 }
   0x4   :  { %37 = dma.hbm_to_vmem [thread:$0]  %s33_s23, 128, %s35_s25, [#allocation6]  }
   0x5   :  { %s21_s30 = sshll.u32 %s470_s29, 4  ;;  %s46_s9 = sshll.u32 %s574_s5, 4  ;;  %s22_s30 = int_to_ptr.vmem [resolvable:$true] %s21_s30  ;;  %s47_s9 = int_to_ptr.hbm [resolvable:$true] %s46_s9 }
   0x6   :  { %24 = dma.hbm_to_vmem [thread:$0]  %s20_s28, 128, %s22_s30, [#allocation3]  }
   0x7   :  { %s471_s2 = smov [#allocation7]   ;;  %s472_s11 = smov 128  }
   0x8   :  { %s48_s10 = sshll.u32 %s471_s2, 4  ;;  %s473_s12 = smov 8   ;;  %s49_s10 = int_to_ptr.vmem [resolvable:$true] %s48_s10 }
   0x9   :  { %54 = dma.hbm_to_vmem [thread:$0]  %s47_s9, 256, %s49_s10, [#allocation6], %s472_s11, %s472_s11, %s473_s12  }
   0xa   :  { %463 = dma.done.wait [#allocation3], 128  }
   0xb   :  { %464 = vsyncadd [#allocation3], 4294967168 }
   0xc   :  { %465 = dma.done.wait [#allocation6], 384  }
   0xd   :  { %466 = vsyncadd [#allocation6], 4294966912  ;;  %v67_v0 = vld [vmem:[#allocation2] sm:$0xff]  ;;  %s474_s0 = smov 127   ;;  %s475_s13 = smov 1   ;;  %vm85_vm0 = vcmask 195584  }
   0xe   :  { %78 = vrot.lane.b32.xlu0 %v67_v0, %s474_s0  ;;  %v348_v1 = vld [vmem:[#allocation7 + $0x2] ss:$0 sm:$0xff]  ;;  %v350_v2 = vld [vmem:[#allocation7 + $0x1] ss:$0 sm:$0xff]  ;;  %v349_v6 = vld [vmem:[#allocation7] ss:$0 sm:$0xff] }
   0xf   :  { %v77_v5 = vmul.f32 %v350_v2, %v67_v0  ;;  %v83_v9 = vld [vmem:[%s570_s1] sm:$0xff]  ;;  %v476_v12 = vmov 0   ;;  %v84_v20 = vld [vmem:[%s570_s1 + $0x8] sm:$0xff]  ;;  %s478_s20 = smov 124   ;;  %s479_s21 = smov 123   ;;  %vm238_vm4 = vcmask 654336  }
  0x10   :  { %345 = vset.pattern.permute.xlu2 %v476_v12  ;;  %347 = vset.pattern.permute.xlu1 %v476_v12  ;;  %v542_v27 = vld [vmem:[%s572_s3] sm:$0xff]  ;;  %s477_s3 = smov 125   ;;  %s480_s22 = smov 126   ;;  %v356_v43 = vld [vmem:[#allocation7 + $0xc] ss:$0 sm:$0xff] }
  0x11   :  { %346 = vset.pattern.permute.xlu0 %v476_v12  ;;  %v548_v32 = vld [vmem:[%s573_s4] sm:$0xff]  ;;  %s481_s4 = smov 2   ;;  %s482_s23 = smov 4   ;;  %v355_v44 = vld [vmem:[#allocation7 + $0xb] ss:$0 sm:$0xff] }
  0x12   :  { %s483_s24 = smov 3   ;;  %v351_v47 = vld [vmem:[#allocation7 + $0xa] ss:$0 sm:$0xff]  ;;  %v357_v52 = vld [vmem:[#allocation7 + $0x9] ss:$0 sm:$0xff]  ;;  %s484_s25 = smov [#allocation8]  }
  0x13   :  { %v352_v53 = vld [vmem:[#allocation7 + $0x8] ss:$0 sm:$0xff]  ;;  %v358_v56 = vld [vmem:[#allocation7 + $0x7] ss:$0 sm:$0xff]  ;;  %v359_v59 = vld [vmem:[#allocation7 + $0x6] ss:$0 sm:$0xff] }
  0x14   :  { %v353_v61 = vld [vmem:[#allocation7 + $0x5] ss:$0 sm:$0xff]  ;;  %v354_v2 = vld [vmem:[#allocation7 + $0x3] ss:$0 sm:$0xff]  ;;  %s313_s26 = sshll.u32 %s484_s25, 4  ;;  %s315_s29 = sshll.u32 %s575_s6, 4  ;;  %s314_s26 = int_to_ptr.vmem [resolvable:$true] %s313_s26  ;;  %s316_s29 = int_to_ptr.hbm [resolvable:$true] %s315_s29 }
  0x16   :  { %70 = vrot.lane.b32.xlu0 %v67_v0, %s475_s13 }
  0x80   :  { %v79_v3 = vpop.permute.xlu0 %78 }
  0x81   :  { %v82_v4 = vmul.f32 %v348_v1, %v79_v3  ;;  %v360_v1 = vld [vmem:[#allocation7 + $0x4] ss:$0 sm:$0xff] }
  0x83   :  { %105 = vmatpush.msra.mxu0 %v82_v4 }
  0x85   :  { %106 = vmatpush.msra.mxu0 %v77_v5 }
  0x88   :  { %v71_v7 = vpop.permute.xlu0 %70 }
  0x89   :  { %v74_v8 = vmul.f32 %v349_v6, %v71_v7  ;;  %v237_v7 = vld [vmem:[#allocation5] sm:$0xff] }
  0x8b   :  { %107 = vmatpush.msra.mxu0 %v74_v8 }
  0x8c   :  { %326 = vmatmul.msk.f32.vlgmr.msra.gmra.mxu0 %vm85_vm0, %v83_v9 }
  0x94   :  { %327 = vmatmul.msk.f32.gmra.mxu0 %vm85_vm0, %v84_v20 }
 0x109   :  { %v109_v10 = vpop.f32.mrf.mxu0 }
 0x10a   :  { %151 = vadd.xlane.f32.xlu1 %v109_v10  ;;  %v154_v11 = vmul.f32 %v109_v10, %v109_v10 }
 0x111   :  { %v554_v40 = vpop.f32.mrf.mxu0 }
 0x112   :  { %155 = vadd.xlane.f32.xlu1 %v154_v11  ;;  %v118_v41 = vmul.f32 %v554_v40, %v554_v40 }
 0x17d   :  { %v152_v13 = vpop.xlane.xlu1 %151 }
 0x17e   :  { %v153_v14 = vmul.f32 0.016666668, %v152_v13 }
 0x180   :  { %v158_v16 = vmul.f32 %v153_v14, %v153_v14 }
 0x185   :  { %v156_v15 = vpop.xlane.xlu1 %155 }
 0x186   :  { %v157_v17 = vmul.f32 0.016666668, %v156_v15 }
 0x188   :  { %v159_v18 = vsub.f32 %v157_v17, %v158_v16 }
 0x18a   :  { %v160_v19 = vmax.f32 %v159_v18, 0.0 }
 0x18c   :  { %v161_v21 = vadd.f32 1e-05, %v160_v19 }
 0x18e   :  { %361 = vrsqrt.f32 %v161_v21  ;;  %vm168_vm2 = vweird.f32 %v161_v21 }
 0x194   :  { %v362_v22 = vpop.eup %361 }
 0x195   :  { %v163_v23 = vmul.f32 %v362_v22, %v161_v21  ;;  %vm169_vm1 = vweird.f32 %v362_v22 }
 0x196   :  { %vm170_vm3 = vmor %vm168_vm2, %vm169_vm1 }
 0x197   :  { %v164_v24 = vmul.f32 %v362_v22, %v163_v23 }
 0x199   :  { %v165_v25 = vmul.f32 0.5, %v164_v24 }
 0x19b   :  { %v166_v26 = vsub.f32 1.5, %v165_v25 }
 0x19d   :  { %v167_v28 = vmul.f32 %v362_v22, %v166_v26 }
 0x19f   :  { %v171_v29 = vsel %vm170_vm3, %v362_v22, %v167_v28 }
 0x1a0   :  { %v172_v30 = vmul.f32 %v171_v29, %v542_v27 }
 0x1a2   :  { %177 = vperm.xlu2 %345, %v172_v30   ;;  %v173_v31 = vmul.f32 %v172_v30, %v153_v14 }
 0x1a4   :  { %v174_v33 = vsub.f32 %v548_v32, %v173_v31 }
 0x1aa   :  { %183 = vperm.xlu2 %345, %v174_v33  }
 0x1fc   :  { %v178_v34 = vpop.permute.xlu2 %177 }
 0x1fd   :  { %v180_v35 = vmul.f32 %v178_v34, %v109_v10 }
 0x204   :  { %v184_v36 = vpop.permute.xlu2 %183 }
 0x205   :  { %v186_v37 = vadd.f32 %v184_v36, %v180_v35 }
 0x207   :  { %v187_v38 = vmax.f32 %v186_v37, 0.0 }
 0x209   :  { %v188_v39 = vmin.f32 %v187_v38, 6.0 }
 0x20b   :  { %222 = vrot.lane.b32.xlu2 %v188_v39, %s477_s3  ;;  %227 = vrot.lane.b32.xlu1 %v188_v39, %s478_s20  ;;  %v211_v58 = vmul.f32 %v358_v56, %v188_v39 }
 0x20c   :  { %232 = vrot.lane.b32.xlu0 %v188_v39, %s479_s21 }
 0x213   :  { %212 = vrot.lane.b32.xlu2 %v188_v39, %s474_s0 }
 0x214   :  { %217 = vrot.lane.b32.xlu0 %v188_v39, %s480_s22 }
 0x21b   :  { %199 = vrot.lane.b32.xlu2 %v188_v39, %s481_s4 }
 0x21c   :  { %204 = vrot.lane.b32.xlu0 %v188_v39, %s475_s13 }
 0x223   :  { %189 = vrot.lane.b32.xlu2 %v188_v39, %s482_s23 }
 0x224   :  { %194 = vrot.lane.b32.xlu0 %v188_v39, %s483_s24 }
 0x235   :  { %115 = vadd.xlane.f32.xlu1 %v554_v40 }
 0x24c   :  { %119 = vadd.xlane.f32.xlu2 %v118_v41 }
 0x265   :  { %v223_v42 = vpop.permute.xlu2 %222 }
 0x266   :  { %v226_v51 = vmul.f32 %v351_v47, %v223_v42 }
 0x26d   :  { %v213_v50 = vpop.permute.xlu2 %212 }
 0x26e   :  { %v216_v57 = vmul.f32 %v352_v53, %v213_v50 }
 0x275   :  { %v200_v60 = vpop.permute.xlu2 %199 }
 0x276   :  { %v203_v0 = vmul.f32 %v353_v61, %v200_v60 }
 0x27d   :  { %v228_v45 = vpop.permute.xlu1 %227  ;;  %v190_v3 = vpop.permute.xlu2 %189 }
 0x27e   :  { %v233_v46 = vpop.permute.xlu0 %232  ;;  %v231_v49 = vmul.f32 %v355_v44, %v228_v45  ;;  %v193_v6 = vmul.f32 %v354_v2, %v190_v3 }
 0x27f   :  { %v236_v48 = vmul.f32 %v356_v43, %v233_v46 }
 0x281   :  { %248 = vmatpush.msra.mxu1 %v236_v48 }
 0x283   :  { %249 = vmatpush.msra.mxu1 %v231_v49 }
 0x285   :  { %250 = vmatpush.msra.mxu1 %v226_v51 }
 0x286   :  { %v218_v54 = vpop.permute.xlu0 %217 }
 0x287   :  { %v221_v55 = vmul.f32 %v357_v52, %v218_v54 }
 0x289   :  { %251 = vmatpush.msra.mxu1 %v221_v55 }
 0x28b   :  { %252 = vmatpush.msra.mxu1 %v216_v57 }
 0x28d   :  { %253 = vmatpush.msra.mxu1 %v211_v58 }
 0x28e   :  { %v205_v62 = vpop.permute.xlu0 %204 }
 0x28f   :  { %v208_v63 = vmul.f32 %v359_v59, %v205_v62 }
 0x291   :  { %254 = vmatpush.msra.mxu1 %v208_v63 }
 0x293   :  { %255 = vmatpush.msra.mxu1 %v203_v0 }
 0x296   :  { %v195_v4 = vpop.permute.xlu0 %194 }
 0x297   :  { %v198_v5 = vmul.f32 %v360_v1, %v195_v4 }
 0x299   :  { %256 = vmatpush.msra.mxu1 %v198_v5 }
 0x29b   :  { %257 = vmatpush.msra.mxu1 %v193_v6 }
 0x29c   :  { %328 = vmatmul.msk.f32.vlgmr.msra.gmra.mxu1 %vm238_vm4, %v237_v7 }
 0x2a8   :  { %v116_v8 = vpop.xlane.xlu1 %115 }
 0x2a9   :  { %v117_v9 = vmul.f32 0.016666668, %v116_v8 }
 0x2ab   :  { %v122_v10 = vmul.f32 %v117_v9, %v117_v9 }
 0x2bf   :  { %v120_v11 = vpop.xlane.xlu2 %119 }
 0x2c0   :  { %v121_v12 = vmul.f32 0.016666668, %v120_v11 }
 0x2c2   :  { %v123_v13 = vsub.f32 %v121_v12, %v122_v10 }
 0x2c4   :  { %v124_v14 = vmax.f32 %v123_v13, 0.0 }
 0x2c6   :  { %v125_v15 = vadd.f32 1e-05, %v124_v14 }
 0x2c8   :  { %363 = vrsqrt.f32 %v125_v15  ;;  %vm132_vm5 = vweird.f32 %v125_v15 }
 0x2ce   :  { %v364_v16 = vpop.eup %363 }
 0x2cf   :  { %v127_v17 = vmul.f32 %v364_v16, %v125_v15  ;;  %vm133_vm6 = vweird.f32 %v364_v16 }
 0x2d0   :  { %vm134_vm7 = vmor %vm132_vm5, %vm133_vm6 }
 0x2d1   :  { %v128_v18 = vmul.f32 %v364_v16, %v127_v17 }
 0x2d3   :  { %v129_v19 = vmul.f32 0.5, %v128_v18 }
 0x2d5   :  { %v130_v20 = vsub.f32 1.5, %v129_v19 }
 0x2d7   :  { %v131_v21 = vmul.f32 %v364_v16, %v130_v20 }
 0x2d9   :  { %v135_v22 = vsel %vm134_vm7, %v364_v16, %v131_v21 }
 0x2da   :  { %v136_v23 = vmul.f32 %v135_v22, %v542_v27 }
 0x2dc   :  { %141 = vperm.xlu2 %345, %v136_v23   ;;  %v137_v26 = vmul.f32 %v136_v23, %v117_v9 }
 0x2de   :  { %v138_v28 = vsub.f32 %v548_v32, %v137_v26 }
 0x319   :  { %v259_v24 = vpop.f32.mrf.mxu1 }
 0x31a   :  { %262 = vadd.xlane.f32.xlu0 %v259_v24  ;;  %v265_v25 = vmul.f32 %v259_v24, %v259_v24 }
 0x31c   :  { %266 = vadd.xlane.f32.xlu1 %v265_v25 }
 0x335   :  { %147 = vperm.xlu1 %347, %v138_v28  }
 0x336   :  { %v142_v49 = vpop.permute.xlu2 %141 }
 0x337   :  { %v144_v52 = vmul.f32 %v142_v49, %v554_v40 }
 0x38d   :  { %v263_v29 = vpop.xlane.xlu0 %262 }
 0x38e   :  { %v264_v30 = vmul.f32 0.016666668, %v263_v29 }
 0x38f   :  { %v267_v31 = vpop.xlane.xlu1 %266 }
 0x390   :  { %v269_v33 = vmul.f32 %v264_v30, %v264_v30  ;;  %v268_v34 = vmul.f32 0.016666668, %v267_v31 }
 0x392   :  { %v270_v35 = vsub.f32 %v268_v34, %v269_v33 }
 0x394   :  { %v271_v36 = vmax.f32 %v270_v35, 0.0 }
 0x396   :  { %v272_v37 = vadd.f32 1e-05, %v271_v36 }
 0x398   :  { %365 = vrsqrt.f32 %v272_v37  ;;  %vm279_vm9 = vweird.f32 %v272_v37 }
 0x39e   :  { %v366_v38 = vpop.eup %365 }
 0x39f   :  { %v274_v39 = vmul.f32 %v366_v38, %v272_v37  ;;  %vm280_vm8 = vweird.f32 %v366_v38 }
 0x3a0   :  { %vm281_vm10 = vmor %vm279_vm9, %vm280_vm8 }
 0x3a1   :  { %v275_v41 = vmul.f32 %v366_v38, %v274_v39 }
 0x3a3   :  { %v276_v42 = vmul.f32 0.5, %v275_v41 }
 0x3a5   :  { %v277_v43 = vsub.f32 1.5, %v276_v42 }
 0x3a7   :  { %v278_v44 = vmul.f32 %v366_v38, %v277_v43  ;;  %v148_v50 = vpop.permute.xlu1 %147 }
 0x3a8   :  { %v150_v55 = vadd.f32 %v148_v50, %v144_v52 }
 0x3a9   :  { %v282_v45 = vsel %vm281_vm10, %v366_v38, %v278_v44 }
 0x3aa   :  { %v283_v46 = vmul.f32 %v282_v45, %v542_v27 }
 0x3ac   :  { %288 = vperm.xlu0 %346, %v283_v46   ;;  %v284_v47 = vmul.f32 %v283_v46, %v264_v30 }
 0x3ae   :  { %v285_v48 = vsub.f32 %v548_v32, %v284_v47 }
 0x3b0   :  { %294 = vperm.xlu2 %345, %v285_v48  }
 0x40a   :  { %v295_v54 = vpop.permute.xlu2 %294 }
 0x41e   :  { %v289_v51 = vpop.permute.xlu0 %288 }
 0x41f   :  { %v291_v53 = vmul.f32 %v289_v51, %v259_v24 }
 0x421   :  { %v297_v56 = vadd.f32 %v295_v54, %v291_v53 }
 0x423   :  { %v298_v57 = vadd.f32 %v297_v56, %v150_v55 }
 0x425   :  { %v299_v58 = vmax.f32 %v298_v57, 0.0 }
 0x427   :  { %v300_v59 = vmin.f32 %v299_v58, 6.0 }
 0x429   :  { %304 = vrot.lane.b32.xlu2 %v300_v59, %s480_s22  ;;  %301 = vrot.lane.b32.xlu1 %v300_v59, %s474_s0 }
 0x483   :  { %v305_v40 = vpop.permute.xlu2 %304 }
 0x49b   :  { %v302_v27 = vpop.permute.xlu1 %301 }
 0x49c   :  { %v303_v32 = vmax.f32 %v300_v59, %v302_v27 }
 0x49e   :  { %v306_v60 = vmax.f32 %v303_v32, %v305_v40 }
 0x4a0   :  { %307 = vst [vmem:[#allocation8] sm:$0xff] %v306_v60 }
 0x4a1   :  { %318 = dma.vmem_to_hbm [thread:$0]  %s314_s26, 128, %s316_s29, [#allocation4]  }
 0x4a2   :  { %467 = dma.done.wait [#allocation4], 128  }
 0x4a3   :  { %468 = vsyncadd [#allocation4], 4294967168 }
 0x4a4   :  { %323 = vsyncpa [#allocation3], 1 }
 0x4a5   :  { %324 = vsyncpa [#allocation6], 1 }
 0x4a6   :  { %325 = vsyncpa [#allocation4], 1 }

</bundles_post_ra>
